<compile_context>
chip_gen: v6e
topology: v6e:2x2x1
jax: 0.10.0
libtpu: 0.0.40
codegen_flags: <defaults>
</compile_context>

<pallas_src>
import functools

import jax
import jax.numpy as jnp
from jax.experimental import pallas as pl
from jax.experimental.pallas import tpu as pltpu


def _stage1_kernel(x_ref, wc_ref, bc_ref, wh_ref, bh_ref, eps_ref, z_ref, patch_ref,
                   *, tap_offsets, cin, cz):
    """Fused encode + reparameterized sampling for one batch-block.

    Block shapes (per grid step; N = bblk * Hp*Wp padded-grid columns, channels-major):
      x_ref    : (1, Cin, N + 2*(Wp+1))  zero-padded images, flattened + halo (mxu dtype)
      wc_ref   : (Ch, 9*Cin)             3x3 conv weight, transposed (mxu dtype)
      bc_ref   : (Ch, 1)                 f32
      wh_ref   : (2*Cz, Ch)              fused [mu ; log_var] head weight (mxu dtype)
      bh_ref   : (2*Cz, 1)               f32
      eps_ref  : (1, Cz, N)              N(0,1) reparameterization noise, f32
      z_ref    : (1, Cz, N)              output, f32
      patch_ref: (9*Cin, N)              VMEM scratch: channels-major im2col patch
    """
    n = patch_ref.shape[1]
    x = x_ref[0]                                    # (Cin, Mext), resident in VMEM

    # Build the channels-major im2col patch ONCE: each 3x3 tap is a single contiguous
    # lane-offset slice of the padded-flat image block (no per-row gathers).
    for t, off in enumerate(tap_offsets):
        patch_ref[t * cin:(t + 1) * cin, :] = x[:, off:off + n]

    # Conv3x3 as ONE MXU matmul with K = 9*Cin (bf16 operands, f32 accumulation).
    h = jnp.dot(wc_ref[...], patch_ref[...], preferred_element_type=jnp.float32)  # (Ch, N)
    h = h + bc_ref[...]
    h = h * jax.nn.sigmoid(h)                       # SiLU, lane-dense f32

    # Fused mu / log_var heads: (2*Cz, Ch) @ (Ch, N) -> (2*Cz, N), still lane-dense.
    ml = jnp.dot(wh_ref[...], h.astype(wh_ref.dtype), preferred_element_type=jnp.float32)
    ml = ml + bh_ref[...]
    mu = ml[:cz, :]
    sigma = jnp.exp(0.5 * ml[cz:, :])

    # Reparameterized sampling with streamed-in eps.
    # TODO(synk): on real TPU, pltpu.prng_seed + pltpu.stateful_normal could generate eps
    #             on-chip (saves the HBM noise stream) but has no interpret-mode lowering.
    z_ref[0] = (mu + eps_ref[0] * sigma).astype(z_ref.dtype)


@functools.partial(jax.jit, static_argnames=("mxu_dtype",))
def stage1_forward(x_nchw, params, key, *, mxu_dtype=jnp.bfloat16):
    """Pallas implementation of Stage1Wrapper.forward.

    Args:
      x_nchw: (B, Cin, H, W) input (PyTorch NCHW convention).
      params: dict of encoder weights (see init_params).
      key:    jax.random key; fresh key per call => fresh reparameterization noise.
    Returns:
      z in NCHW: (B, Cz, H, W), float32.
    """
    B, Cin, H, W = x_nchw.shape
    Ch = params["b_conv"].shape[1]
    Cz = params["w_mu"].shape[1]
    Hp, Wp = H + 2, W + 2
    npad = Hp * Wp
    halo = Wp + 1

    # Batch blocking: pack bblk images per grid step (amortizes the ~0.35us/step overhead)
    # while keeping >= 2 "parallel" steps whenever B >= 2 (both v7x TensorCores busy).
    bblk = max(1, min(B // 2, 8))
    n_steps = -(-B // bblk)
    b_pad = n_steps * bblk
    n_cols = bblk * npad                       # lane-dense column count per step
    m_ext = n_cols + 2 * halo

    # ---- input layout: channels-major, padded-flat + halo, streamed as bf16 ----
    xp = jnp.pad(x_nchw, ((0, b_pad - B), (0, 0), (1, 1), (1, 1)))        # (Bp, Cin, Hp, Wp)
    xf = xp.reshape(b_pad, Cin, npad)
    xf = xf.reshape(n_steps, bblk, Cin, npad).transpose(0, 2, 1, 3)
    xf = xf.reshape(n_steps, Cin, n_cols)
    xf = jnp.pad(xf, ((0, 0), (0, 0), (halo, halo))).astype(mxu_dtype)    # (S, Cin, Mext)

    # ---- weights: one-time repack; channels-major conv weight, fused heads ----
    wc_t = params["w_conv"].T.astype(mxu_dtype)                                     # (Ch, 9*Cin)
    bc_t = params["b_conv"].T.astype(jnp.float32)                                   # (Ch, 1)
    wh_t = jnp.concatenate([params["w_mu"], params["w_lv"]], axis=1).T.astype(mxu_dtype)   # (2Cz, Ch)
    bh_t = jnp.concatenate([params["b_mu"], params["b_lv"]], axis=1).T.astype(jnp.float32)  # (2Cz, 1)

    # ---- reparameterization noise, laid out exactly like the kernel output blocks ----
    eps = jax.random.normal(key, (n_steps, Cz, n_cols), jnp.float32)

    tap_offsets = tuple(dy * Wp + dx for dy in range(3) for dx in range(3))
    kernel = functools.partial(_stage1_kernel, tap_offsets=tap_offsets, cin=Cin, cz=Cz)

    z_flat = pl.pallas_call(
        kernel,
        out_shape=jax.ShapeDtypeStruct((n_steps, Cz, n_cols), jnp.float32),
        grid_spec=pltpu.PrefetchScalarGridSpec(
            num_scalar_prefetch=0,
            grid=(n_steps,),
            in_specs=[
                pl.BlockSpec((1, Cin, m_ext), lambda s: (s, 0, 0)),
                # TODO(synk): at real encoder sizes, stage these constant-index weight
                # blocks into a once-DMA'd scratch so they are not double-buffered (v7x
                # 64 MiB VMEM budget); negligible at demo sizes.
                pl.BlockSpec((Ch, 9 * Cin), lambda s: (0, 0)),
                pl.BlockSpec((Ch, 1), lambda s: (0, 0)),
                pl.BlockSpec((2 * Cz, Ch), lambda s: (0, 0)),
                pl.BlockSpec((2 * Cz, 1), lambda s: (0, 0)),
                pl.BlockSpec((1, Cz, n_cols), lambda s: (s, 0, 0)),
            ],
            out_specs=pl.BlockSpec((1, Cz, n_cols), lambda s: (s, 0, 0)),
            scratch_shapes=[pltpu.VMEM((9 * Cin, n_cols), mxu_dtype)],
        ),
        compiler_params=pltpu.CompilerParams(
            dimension_semantics=("parallel",),
            vmem_limit_bytes=48 * 1024 * 1024,
        ),
    )(xf, wc_t, bc_t, wh_t, bh_t, eps)

    # Crop the interior of the padded grid back to NCHW (cheap XLA reshape/slice).
    z = z_flat.reshape(n_steps, Cz, bblk, npad).transpose(0, 2, 1, 3)
    z = z.reshape(b_pad, Cz, Hp, Wp)[:B, :, 1:-1, 1:-1]
    return z


def init_params(key, c_in, c_hidden, c_latent):
    k0, k1, k2 = jax.random.split(key, 3)
    scale_c = 1.0 / jnp.sqrt(9 * c_in)
    scale_h = 1.0 / jnp.sqrt(c_hidden)
    return {
        "w_conv": jax.random.normal(k0, (9 * c_in, c_hidden), jnp.float32) * scale_c,
        "b_conv": jnp.zeros((1, c_hidden), jnp.float32),
        "w_mu":   jax.random.normal(k1, (c_hidden, c_latent), jnp.float32) * scale_h,
        "b_mu":   jnp.zeros((1, c_latent), jnp.float32),
        "w_lv":   jax.random.normal(k2, (c_hidden, c_latent), jnp.float32) * scale_h,
        "b_lv":   jnp.zeros((1, c_latent), jnp.float32),
    }


# ----------------------------- pure-JAX reference ----------------------------- #

def _im2col_3x3(x_nhwc):
    B, H, W, C = x_nhwc.shape
    xp = jnp.pad(x_nhwc, ((0, 0), (1, 1), (1, 1), (0, 0)))
    taps = [xp[:, dy:dy + H, dx:dx + W, :] for dy in range(3) for dx in range(3)]
    return jnp.concatenate(taps, axis=-1).reshape(B * H * W, 9 * C)


def _reference_encode(x_nchw, params, mxu_dtype=jnp.bfloat16):
    """Pure-JAX mu / sigma with the same operand quantization as the kernel (NCHW outputs)."""
    B, Cin, H, W = x_nchw.shape
    q = lambda a: a.astype(mxu_dtype)
    p = _im2col_3x3(jnp.transpose(x_nchw, (0, 2, 3, 1)))
    h = jnp.dot(q(p), q(params["w_conv"]), preferred_element_type=jnp.float32) + params["b_conv"]
    h = h * jax.nn.sigmoid(h)
    mu = jnp.dot(q(h), q(params["w_mu"]), preferred_element_type=jnp.float32) + params["b_mu"]
    lv = jnp.dot(q(h), q(params["w_lv"]), preferred_element_type=jnp.float32) + params["b_lv"]
    Cz = mu.shape[-1]
    to_nchw = lambda a: jnp.transpose(a.reshape(B, H, W, Cz), (0, 3, 1, 2))
    return to_nchw(mu), to_nchw(jnp.exp(0.5 * lv))


if __name__ == "__main__":
    B, C_IN, H, W = 2, 4, 16, 16
    C_HIDDEN, C_LATENT = 32, 8

    root = jax.random.PRNGKey(0)
    k_x, k_param, k_eps = jax.random.split(root, 3)
    x = jax.random.normal(k_x, (B, C_IN, H, W), jnp.float32)
    params = init_params(k_param, C_IN, C_HIDDEN, C_LATENT)

    # Run the fused kernel.
    z = jax.block_until_ready(stage1_forward(x, params, k_eps))
    assert z.shape == (B, C_LATENT, H, W)
    assert bool(jnp.all(jnp.isfinite(z)))

    mu_ref, sigma_ref = _reference_encode(x, params)

    # Check 1 (deterministic): force sigma ~ 0 so z == mu -> exact encoder-path check.
    params_det = dict(params)
    params_det["w_lv"] = jnp.zeros_like(params["w_lv"])
    params_det["b_lv"] = jnp.full_like(params["b_lv"], -60.0)     # sigma = exp(-30) ~ 1e-13
    mu_det, _ = _reference_encode(x, params_det)
    z_det = jax.block_until_ready(stage1_forward(x, params_det, k_eps))
    assert jnp.allclose(z_det, mu_det, atol=5e-3, rtol=5e-3), \
        float(jnp.max(jnp.abs(z_det - mu_det)))

    # Check 2 (statistical): standardized residual of the sampled z should be ~ N(0, 1).
    r = (z - mu_ref) / sigma_ref                                  # 4096 samples
    assert abs(float(jnp.mean(r))) < 0.15
    assert abs(float(jnp.std(r)) - 1.0) < 0.15

    print("KERNEL_OK")
</pallas_src>

<mosaic_0001>
module attributes {stable_mosaic.version = 11 : i64} {
  func.func @_stage1_kernel(%arg0: i32, %arg1: memref<1x4x362xbf16, #tpu.memory_space<vmem>>, %arg2: memref<32x36xbf16, #tpu.memory_space<vmem>>, %arg3: memref<32x1xf32, #tpu.memory_space<vmem>>, %arg4: memref<16x32xbf16, #tpu.memory_space<vmem>>, %arg5: memref<16x1xf32, #tpu.memory_space<vmem>>, %arg6: memref<1x8x324xf32, #tpu.memory_space<vmem>>, %arg7: memref<1x8x324xf32, #tpu.memory_space<vmem>>, %arg8: memref<36x324xbf16, #tpu.memory_space<vmem>>) attributes {dimension_semantics = [#tpu.dimension_semantics<parallel>], iteration_bounds = array<i64: 2>, scalar_prefetch = 0 : i64, scratch_operands = 1 : i64, tpu.core_type = #tpu.core_type<tc>, window_params = [{transform_indices = @transform_0, window_bounds = array<i64: 1, 4, 362>}, {pipeline_mode = #tpu.pipeline_mode<synchronous>, transform_indices = @transform_1, window_bounds = array<i64: 32, 36>}, {pipeline_mode = #tpu.pipeline_mode<synchronous>, transform_indices = @transform_2, window_bounds = array<i64: 32, 1>}, {pipeline_mode = #tpu.pipeline_mode<synchronous>, transform_indices = @transform_3, window_bounds = array<i64: 16, 32>}, {pipeline_mode = #tpu.pipeline_mode<synchronous>, transform_indices = @transform_4, window_bounds = array<i64: 16, 1>}, {transform_indices = @transform_5, window_bounds = array<i64: 1, 8, 324>}, {transform_indices = @transform_6, window_bounds = array<i64: 1, 8, 324>}]} {
    %c0 = arith.constant 0 : index
    %c0_0 = arith.constant 0 : index
    %c0_1 = arith.constant 0 : index
    %0 = vector.load %arg1[%c0, %c0_0, %c0_1] : memref<1x4x362xbf16, #tpu.memory_space<vmem>>, vector<1x4x362xbf16>
    %1 = vector.shape_cast %0 : vector<1x4x362xbf16> to vector<4x362xbf16>
    %2 = vector.extract_strided_slice %1 {offsets = [0, 0], sizes = [4, 324], strides = [1, 1]} : vector<4x362xbf16> to vector<4x324xbf16>
    %c0_2 = arith.constant 0 : index
    %c0_3 = arith.constant 0 : index
    %3 = vector.load %arg8[%c0_2, %c0_3] : memref<36x324xbf16, #tpu.memory_space<vmem>>, vector<4x324xbf16>
    tpu.vector_store %arg8[%c0_2, %c0_3], %2 {strides = array<i32>} : memref<36x324xbf16, #tpu.memory_space<vmem>>, vector<4x324xbf16>,
    %4 = vector.extract_strided_slice %1 {offsets = [0, 1], sizes = [4, 324], strides = [1, 1]} : vector<4x362xbf16> to vector<4x324xbf16>
    %c4 = arith.constant 4 : index
    %c0_4 = arith.constant 0 : index
    %5 = vector.load %arg8[%c4, %c0_4] : memref<36x324xbf16, #tpu.memory_space<vmem>>, vector<4x324xbf16>
    tpu.vector_store %arg8[%c4, %c0_4], %4 {strides = array<i32>} : memref<36x324xbf16, #tpu.memory_space<vmem>>, vector<4x324xbf16>,
    %6 = vector.extract_strided_slice %1 {offsets = [0, 2], sizes = [4, 324], strides = [1, 1]} : vector<4x362xbf16> to vector<4x324xbf16>
    %c8 = arith.constant 8 : index
    %c0_5 = arith.constant 0 : index
    %7 = vector.load %arg8[%c8, %c0_5] : memref<36x324xbf16, #tpu.memory_space<vmem>>, vector<4x324xbf16>
    tpu.vector_store %arg8[%c8, %c0_5], %6 {strides = array<i32>} : memref<36x324xbf16, #tpu.memory_space<vmem>>, vector<4x324xbf16>,
    %8 = vector.extract_strided_slice %1 {offsets = [0, 18], sizes = [4, 324], strides = [1, 1]} : vector<4x362xbf16> to vector<4x324xbf16>
    %c12 = arith.constant 12 : index
    %c0_6 = arith.constant 0 : index
    %9 = vector.load %arg8[%c12, %c0_6] : memref<36x324xbf16, #tpu.memory_space<vmem>>, vector<4x324xbf16>
    tpu.vector_store %arg8[%c12, %c0_6], %8 {strides = array<i32>} : memref<36x324xbf16, #tpu.memory_space<vmem>>, vector<4x324xbf16>,
    %10 = vector.extract_strided_slice %1 {offsets = [0, 19], sizes = [4, 324], strides = [1, 1]} : vector<4x362xbf16> to vector<4x324xbf16>
    %c16 = arith.constant 16 : index
    %c0_7 = arith.constant 0 : index
    %11 = vector.load %arg8[%c16, %c0_7] : memref<36x324xbf16, #tpu.memory_space<vmem>>, vector<4x324xbf16>
    tpu.vector_store %arg8[%c16, %c0_7], %10 {strides = array<i32>} : memref<36x324xbf16, #tpu.memory_space<vmem>>, vector<4x324xbf16>,
    %12 = vector.extract_strided_slice %1 {offsets = [0, 20], sizes = [4, 324], strides = [1, 1]} : vector<4x362xbf16> to vector<4x324xbf16>
    %c20 = arith.constant 20 : index
    %c0_8 = arith.constant 0 : index
    %13 = vector.load %arg8[%c20, %c0_8] : memref<36x324xbf16, #tpu.memory_space<vmem>>, vector<4x324xbf16>
    tpu.vector_store %arg8[%c20, %c0_8], %12 {strides = array<i32>} : memref<36x324xbf16, #tpu.memory_space<vmem>>, vector<4x324xbf16>,
    %14 = vector.extract_strided_slice %1 {offsets = [0, 36], sizes = [4, 324], strides = [1, 1]} : vector<4x362xbf16> to vector<4x324xbf16>
    %c24 = arith.constant 24 : index
    %c0_9 = arith.constant 0 : index
    %15 = vector.load %arg8[%c24, %c0_9] : memref<36x324xbf16, #tpu.memory_space<vmem>>, vector<4x324xbf16>
    tpu.vector_store %arg8[%c24, %c0_9], %14 {strides = array<i32>} : memref<36x324xbf16, #tpu.memory_space<vmem>>, vector<4x324xbf16>,
    %16 = vector.extract_strided_slice %1 {offsets = [0, 37], sizes = [4, 324], strides = [1, 1]} : vector<4x362xbf16> to vector<4x324xbf16>
    %c28 = arith.constant 28 : index
    %c0_10 = arith.constant 0 : index
    %17 = vector.load %arg8[%c28, %c0_10] : memref<36x324xbf16, #tpu.memory_space<vmem>>, vector<4x324xbf16>
    tpu.vector_store %arg8[%c28, %c0_10], %16 {strides = array<i32>} : memref<36x324xbf16, #tpu.memory_space<vmem>>, vector<4x324xbf16>,
    %18 = vector.extract_strided_slice %1 {offsets = [0, 38], sizes = [4, 324], strides = [1, 1]} : vector<4x362xbf16> to vector<4x324xbf16>
    %c32 = arith.constant 32 : index
    %c0_11 = arith.constant 0 : index
    %19 = vector.load %arg8[%c32, %c0_11] : memref<36x324xbf16, #tpu.memory_space<vmem>>, vector<4x324xbf16>
    tpu.vector_store %arg8[%c32, %c0_11], %18 {strides = array<i32>} : memref<36x324xbf16, #tpu.memory_space<vmem>>, vector<4x324xbf16>,
    %c0_12 = arith.constant 0 : index
    %c0_13 = arith.constant 0 : index
    %20 = vector.load %arg2[%c0_12, %c0_13] : memref<32x36xbf16, #tpu.memory_space<vmem>>, vector<32x36xbf16>
    %c0_14 = arith.constant 0 : index
    %c0_15 = arith.constant 0 : index
    %21 = vector.load %arg8[%c0_14, %c0_15] : memref<36x324xbf16, #tpu.memory_space<vmem>>, vector<36x324xbf16>
    %cst = arith.constant dense<0.000000e+00> : vector<32x324xf32>
    %22 = tpu.matmul %20, %21, %cst {dimension_numbers = #tpu.dot_dimension_numbers<[1], [0], [0], [1], [0, 0, 1, 1], [], []>} : vector<32x36xbf16>, vector<36x324xbf16>, vector<32x324xf32> -> vector<32x324xf32>
    %c0_16 = arith.constant 0 : index
    %c0_17 = arith.constant 0 : index
    %23 = vector.load %arg3[%c0_16, %c0_17] : memref<32x1xf32, #tpu.memory_space<vmem>>, vector<32x1xf32>
    %24 = vector.broadcast %23 : vector<32x1xf32> to vector<32x324xf32>
    %25 = arith.addf %22, %24 : vector<32x324xf32>
    %26 = arith.negf %25 : vector<32x324xf32>
    %27 = math.exp %26 : vector<32x324xf32>
    %cst_18 = arith.constant 1.000000e+00 : f32
    %28 = vector.broadcast %cst_18 : f32 to vector<32x324xf32>
    %29 = arith.addf %28, %27 : vector<32x324xf32>
    %30 = arith.divf %28, %29 : vector<32x324xf32>
    %31 = arith.mulf %25, %30 : vector<32x324xf32>
    %c0_19 = arith.constant 0 : index
    %c0_20 = arith.constant 0 : index
    %32 = vector.load %arg4[%c0_19, %c0_20] : memref<16x32xbf16, #tpu.memory_space<vmem>>, vector<16x32xbf16>
    %33 = arith.truncf %31 : vector<32x324xf32> to vector<32x324xbf16>
    %cst_21 = arith.constant dense<0.000000e+00> : vector<16x324xf32>
    %34 = tpu.matmul %32, %33, %cst_21 {dimension_numbers = #tpu.dot_dimension_numbers<[1], [0], [0], [1], [0, 0, 1, 1], [], []>} : vector<16x32xbf16>, vector<32x324xbf16>, vector<16x324xf32> -> vector<16x324xf32>
    %c0_22 = arith.constant 0 : index
    %c0_23 = arith.constant 0 : index
    %35 = vector.load %arg5[%c0_22, %c0_23] : memref<16x1xf32, #tpu.memory_space<vmem>>, vector<16x1xf32>
    %36 = vector.broadcast %35 : vector<16x1xf32> to vector<16x324xf32>
    %37 = arith.addf %34, %36 : vector<16x324xf32>
    %38 = vector.extract_strided_slice %37 {offsets = [0, 0], sizes = [8, 324], strides = [1, 1]} : vector<16x324xf32> to vector<8x324xf32>
    %39 = vector.extract_strided_slice %37 {offsets = [8, 0], sizes = [8, 324], strides = [1, 1]} : vector<16x324xf32> to vector<8x324xf32>
    %cst_24 = arith.constant 5.000000e-01 : f32
    %40 = vector.broadcast %cst_24 : f32 to vector<8x324xf32>
    %41 = arith.mulf %40, %39 : vector<8x324xf32>
    %42 = math.exp %41 : vector<8x324xf32>
    %c0_25 = arith.constant 0 : index
    %c0_26 = arith.constant 0 : index
    %c0_27 = arith.constant 0 : index
    %43 = vector.load %arg6[%c0_25, %c0_26, %c0_27] : memref<1x8x324xf32, #tpu.memory_space<vmem>>, vector<1x8x324xf32>
    %44 = vector.shape_cast %43 : vector<1x8x324xf32> to vector<8x324xf32>
    %45 = arith.mulf %44, %42 : vector<8x324xf32>
    %46 = arith.addf %38, %45 : vector<8x324xf32>
    %c0_28 = arith.constant 0 : index
    %c0_29 = arith.constant 0 : index
    %c0_30 = arith.constant 0 : index
    %47 = vector.load %arg7[%c0_28, %c0_29, %c0_30] : memref<1x8x324xf32, #tpu.memory_space<vmem>>, vector<1x8x324xf32>
    %48 = vector.shape_cast %47 : vector<1x8x324xf32> to vector<8x324xf32>
    %49 = vector.shape_cast %46 : vector<8x324xf32> to vector<1x8x324xf32>
    tpu.vector_store %arg7[%c0_28, %c0_29, %c0_30], %49 {strides = array<i32>} : memref<1x8x324xf32, #tpu.memory_space<vmem>>, vector<1x8x324xf32>,
    return
  }
  func.func @transform_0(%arg0: i32) -> (i32, i32, i32) {
    %c0_i32 = arith.constant 0 : i32
    %c0_i32_0 = arith.constant 0 : i32
    %c0_i32_1 = arith.constant 0 : i32
    return %arg0, %c0_i32, %c0_i32_0 : i32, i32, i32
  }
  func.func @transform_1(%arg0: i32) -> (i32, i32) {
    %c0_i32 = arith.constant 0 : i32
    %c0_i32_0 = arith.constant 0 : i32
    %c0_i32_1 = arith.constant 0 : i32
    return %c0_i32, %c0_i32_0 : i32, i32
  }
  func.func @transform_2(%arg0: i32) -> (i32, i32) {
    %c0_i32 = arith.constant 0 : i32
    %c0_i32_0 = arith.constant 0 : i32
    %c0_i32_1 = arith.constant 0 : i32
    return %c0_i32, %c0_i32_0 : i32, i32
  }
  func.func @transform_3(%arg0: i32) -> (i32, i32) {
    %c0_i32 = arith.constant 0 : i32
    %c0_i32_0 = arith.constant 0 : i32
    %c0_i32_1 = arith.constant 0 : i32
    return %c0_i32, %c0_i32_0 : i32, i32
  }
  func.func @transform_4(%arg0: i32) -> (i32, i32) {
    %c0_i32 = arith.constant 0 : i32
    %c0_i32_0 = arith.constant 0 : i32
    %c0_i32_1 = arith.constant 0 : i32
    return %c0_i32, %c0_i32_0 : i32, i32
  }
  func.func @transform_5(%arg0: i32) -> (i32, i32, i32) {
    %c0_i32 = arith.constant 0 : i32
    %c0_i32_0 = arith.constant 0 : i32
    %c0_i32_1 = arith.constant 0 : i32
    return %arg0, %c0_i32, %c0_i32_0 : i32, i32, i32
  }
  func.func @transform_6(%arg0: i32) -> (i32, i32, i32) {
    %c0_i32 = arith.constant 0 : i32
    %c0_i32_0 = arith.constant 0 : i32
    %c0_i32_1 = arith.constant 0 : i32
    return %arg0, %c0_i32, %c0_i32_0 : i32, i32, i32
  }
}

</mosaic_0001>

<bundles_post_ra>
// kernel: stage1_forward.1
= control target key start
LH: loop header
LB: loop body
LE: loop exit
PB: predicated region body
PF: predicated region fallthrough
CT: control target
= control target key end

     0   :  { %s1117_s21 = smov 0   ;;  %s1255_s0 = inlined_call_operand.vmem [shape: bf16[2,4,362], index: 0, kind: input, shape index: {}]   ;;  %s1256_s1 = inlined_call_operand.vmem [shape: bf16[32,36], index: 1, kind: input, shape index: {}]   ;;  %s1257_s2 = inlined_call_operand.vmem [shape: f32[32,1], index: 2, kind: input, shape index: {}]   ;;  %s1258_s3 = inlined_call_operand.vmem [shape: bf16[16,32], index: 3, kind: input, shape index: {}]   ;;  %s1259_s4 = inlined_call_operand.vmem [shape: f32[16,1], index: 4, kind: input, shape index: {}]   ;;  %s1260_s5 = inlined_call_operand.vmem [shape: f32[2,8,324], index: 5, kind: input, shape index: {}]   ;;  %s1261_s6 = inlined_call_operand.vmem [shape: f32[2,8,324], index: 6, kind: output, shape index: {}]  }
   0x1 LB: > { %s902_s22 = sadd.s32 4294967295, %s1068_s21   ;;  %p906_p0 = scmp.ge.s32.totalorder %s1068_s21, 1  ;;  %s1068_s21 = sphi %s1117_s21, %s16_s21  }
   0x2   : > { %p222_p1 = scmp.lt.s32.totalorder %s1068_s21, 3 }
   0x4   : > { %p223_p2 = pnand %p906_p0, %p222_p1 }
   0x5   : > { %p257_p3 = scmp.lt.s32.totalorder (!%p223_p2), %s902_s22, 1  ;;  %s1071_s27 = smov (!%p223_p2), 109  }
   0x6   : > { %226 = sbr.rel (%p223_p2) target bundleno = 657 (0x291), region = 44  ;;  %s1072_s28 = smov (!%p223_p2), 90  }
   0x7   : > { %s1073_s29 = smov (!%p223_p2), 108   ;;  %s1074_s30 = smov (!%p223_p2), 92  }
   0x8   : > { %s1075_s7 = smov (!%p223_p2), 91   ;;  %s1076_s8 = smov (!%p223_p2), 127  }
   0x9   : > { %s1077_s9 = smov (!%p223_p2), 126   ;;  %s1078_s12 = smov (!%p223_p2), 110  }
   0xb   : > { %v279_v0 = vlaneseq  ;;  %v1070_v1 = vmov 1983009808   ;;  %s1263_s22 = smov (!%p257_p3, %s902_s22), 1  ;;  %vm293_vm0 = vcmask 549888   ;;  %v1135_v12 = vld [vmem:[%s1256_s1] sm:$0xff]   ;;  %vm497_vm1 = vcmask 293888  }
   0xc   : > { %v277_v2 = vunpack.c.l.s4 %v1070_v1  ;;  %s971_s23 = smul.u32 6, %s1263_s22  ;;  %958 = vmatprep.mubr.msk.bf16.mxu1 %vm497_vm1, %v1135_v12  ;;  %v1079_v13 = vmov 0   ;;  %v426_v14 = vld [vmem:[%s1257_s2 + $0x18] sm:$0xff]  ;;  %v425_v15 = vld [vmem:[%s1257_s2 + $0x10] sm:$0xff]  ;;  %v423_v16 = vld [vmem:[%s1257_s2] sm:$0xff]  ;;  %vm316_vm2 = vcmask 551938  }
   0xd   : > { %v280_v3 = vshrl.u32 %v279_v0, 7  ;;  %546 = vmatprep.mubr.bf16.mxu0 %v1079_v13  ;;  %994 = vset.pattern.permute.xlu1 %v1079_v13  ;;  %v424_v17 = vld [vmem:[%s1257_s2 + $0x8] sm:$0xff]  ;;  %v708_v19 = vld [vmem:[%s1259_s4] sm:$0xff]  ;;  %vm309_vm3 = vcmask 1043456   ;;  %vm351_vm4 = vcmask 891904   ;;  %vm403_vm5 = vcmask 736256  }
   0xe   : > { %v278_v4 = vunpack.c.0.s8 %v277_v2  ;;  %s261_s26 = scalar_lea.vmem %s1255_s0, %s971_s23  ;;  %993 = vset.pattern.permute.xlu0 %v1079_v13  ;;  %v709_v18 = vld [vmem:[%s1259_s4 + $0x8] sm:$0xff]  ;;  %vm377_vm6 = vcmask 752640   ;;  %vm364_vm7 = vcmask 883712   ;;  %vm504_vm8 = vcmask 1041408  }
   0xf   : > { %v273_v6 = vld [vmem:[%s261_s26] sm:$0x3f]  ;;  %vm390_vm9 = vcmask 744448   ;;  %vm311_vm10 = vcmask 1039360   ;;  %vm325_vm11 = vcmask 1031168   ;;  %vm338_vm12 = vcmask 900096  }
  0x10   : > { %v281_v5 = vsub.s32 %v278_v4, %v280_v3  ;;  %910 = vst.sshfl [vmem:[#allocation2] sm:$0xf pattern:$0x76325410] %v273_v6  ;;  %v275_v8 = vcombine.high %v273_v6, %v273_v6  ;;  %v295_v10 = vcombine.low %v273_v6, %v273_v6  ;;  %vm1081_vm13 = vmmov 0  }
  0x11   : > { %vm725_vm14 = vcmask 261120   ;;  %vm833_vm15 = vcmask 556032  }
  0x12   : > { %v282_v7 = vrot.slane %v273_v6, %v281_v5  ;;  %v289_v9 = vrot.slane %v275_v8, %v281_v5  ;;  %v302_v11 = vrot.slane %v295_v10, %v281_v5 }
  0x14   : > { %344 = vrot.lane.b32.xlu1 %v282_v7, %s1071_s27  ;;  %396 = vrot.lane.b32.xlu0 %v282_v7, %s1072_s28  ;;  %294 = vst.msk [vmem:[#allocation2 + $0x8] sm:$0x3] %vm293_vm0, %v289_v9 }
  0x18   : > { %359 = vrot.lane.b32.xlu1 %v282_v7, %s1073_s29  ;;  %370 = vrot.lane.b32.xlu0 %v282_v7, %s1074_s30 }
  0x1c   : > { %346 = vrot.lane.b32.xlu1 %v289_v9, %s1071_s27  ;;  %398 = vrot.lane.b32.xlu0 %v289_v9, %s1072_s28 }
  0x20   : > { %372 = vrot.lane.b32.xlu1 %v289_v9, %s1074_s30  ;;  %357 = vrot.lane.b32.xlu0 %v302_v11, %s1073_s29 }
  0x24   : > { %385 = vrot.lane.b32.xlu1 %v282_v7, %s1075_s7  ;;  %383 = vrot.lane.b32.xlu0 %v302_v11, %s1075_s7  ;;  %s972_s7 = smul.u32 24, %s1263_s22 }
  0x26   : > { %s266_s10 = scalar_lea.vmem %s1260_s5, %s972_s7 }
  0x28   : > { %305 = vrot.lane.b32.xlu1 %v282_v7, %s1076_s8  ;;  %303 = vrot.lane.b32.xlu0 %v302_v11, %s1076_s8 }
  0x2c   : > { %320 = vrot.lane.b32.xlu1 %v289_v9, %s1077_s9  ;;  %318 = vrot.lane.b32.xlu0 %v282_v7, %s1077_s9 }
  0x30   : > { %333 = vrot.lane.b32.xlu1 %v282_v7, %s1078_s12  ;;  %331 = vrot.lane.b32.xlu0 %v302_v11, %s1078_s12  ;;  %s271_s12 = scalar_lea.vmem %s1261_s6, %s972_s7 }
  0x34   : > { %444 = vperm.xlu1 %994, %v426_v14   ;;  %439 = vperm.xlu0 %993, %v425_v15  }
  0x38   : > { %429 = vperm.xlu1 %994, %v423_v16   ;;  %434 = vperm.xlu0 %993, %v424_v17   ;;  %v1005_v16 = vld [vmem:[%s1256_s1 + $0x8] sm:$0xff]  }
  0x3c   : > { %717 = vperm.xlu1 %994, %v709_v18   ;;  %712 = vperm.xlu0 %993, %v708_v19   ;;  %v1080_v19 = vmov 0.0  }
  0x86   : > { %v345_v20 = vpop.permute.xlu1 %344  ;;  %v397_v21 = vpop.permute.xlu0 %396 }
  0x87   : > { %v348_v26 = vrot.slane %v345_v20, 4  ;;  %v400_v27 = vrot.slane %v397_v21, 4 }
  0x8a   : > { %v360_v22 = vpop.permute.xlu1 %359  ;;  %v371_v23 = vpop.permute.xlu0 %370 }
  0x8b   : > { %369 = vst.msk [vmem:[#allocation2 + $0x20] sm:$0xc] %vm316_vm2, %v360_v22  ;;  %v362_v36 = vrot.slane %v360_v22, 4  ;;  %v374_v37 = vrot.slane %v371_v23, 4 }
  0x8e   : > { %v347_v24 = vpop.permute.xlu1 %346  ;;  %v399_v25 = vpop.permute.xlu0 %398 }
  0x8f   : > { %v349_v28 = vrot.slane %v347_v24, 4  ;;  %356 = vst.msk [vmem:[#allocation2 + $0x20] sm:$0x3] %vm293_vm0, %v347_v24  ;;  %v401_v29 = vrot.slane %v399_v25, 4  ;;  %408 = vst.msk [vmem:[#allocation2 + $0x38] sm:$0x3] %vm293_vm0, %v399_v25 }
  0x91   : > { %v350_v30 = vsel %vm309_vm3, %v348_v26, %v349_v28  ;;  %v402_v31 = vsel %vm309_vm3, %v400_v27, %v401_v29 }
  0x92   : > { %v352_v32 = vsel %vm351_vm4, %v345_v20, %v350_v30  ;;  %v404_v33 = vsel %vm403_vm5, %v397_v21, %v402_v31  ;;  %v373_v34 = vpop.permute.xlu1 %372  ;;  %v358_v35 = vpop.permute.xlu0 %357 }
  0x93   : > { %355 = vst [vmem:[#allocation2 + $0x18] sm:$0x33] %v352_v32  ;;  %407 = vst [vmem:[#allocation2 + $0x30] sm:$0x33] %v404_v33  ;;  %v375_v38 = vrot.slane %v373_v34, 4  ;;  %v361_v39 = vrot.slane %v358_v35, 4 }
  0x94   : > { %382 = vst.msk [vmem:[#allocation2 + $0x2c] sm:$0x3] %vm293_vm0, %v373_v34 }
  0x95   : > { %v376_v40 = vsel %vm309_vm3, %v374_v37, %v375_v38  ;;  %v363_v41 = vsel %vm309_vm3, %v361_v39, %v362_v36 }
  0x96   : > { %v378_v42 = vsel %vm377_vm6, %v371_v23, %v376_v40  ;;  %v365_v43 = vsel %vm364_vm7, %v358_v35, %v363_v41  ;;  %v386_v44 = vpop.permute.xlu1 %385  ;;  %v384_v45 = vpop.permute.xlu0 %383  ;;  %v995_v46 = vld [vmem:[#allocation2 + $0x38] ss:$0 sps:$4 sm:$0x33]  }
  0x97   : > { %381 = vst [vmem:[#allocation2 + $0x24] sm:$0x33] %v378_v42  ;;  %368 = vst [vmem:[#allocation2 + $0x18] sm:$0xcc] %v365_v43  ;;  %v388_v47 = vrot.slane %v386_v44, 4  ;;  %v387_v48 = vrot.slane %v384_v45, 4  ;;  %970 = vmatprep.subr.msk.bf16.mxu1 %vm504_vm8, %v995_v46 }
  0x98   : > { %395 = vst.msk [vmem:[#allocation2 + $0x2c] sm:$0xc] %vm316_vm2, %v386_v44  ;;  %v512_v49 = vsel %vm504_vm8, %v995_v46, 0 }
  0x99   : > { %v389_v50 = vsel %vm309_vm3, %v387_v48, %v388_v47  ;;  %953 = vmatpush3.bf16.msra.mxu1 %v512_v49 }
  0x9a   : > { %v391_v51 = vsel %vm390_vm9, %v384_v45, %v389_v50  ;;  %v306_v52 = vpop.permute.xlu1 %305  ;;  %v304_v53 = vpop.permute.xlu0 %303  ;;  %v421_v54 = vld [vmem:[#allocation2 + $0x30] sm:$0x33] }
  0x9b   : > { %394 = vst [vmem:[#allocation2 + $0x24] sm:$0xcc] %v391_v51  ;;  %v308_v55 = vrot.slane %v306_v52, 4  ;;  %317 = vst.msk [vmem:[#allocation2 + $0x8] sm:$0xc] %vm316_vm2, %v306_v52  ;;  %v307_v56 = vrot.slane %v304_v53, 4  ;;  %v920_v57 = vcombine.high %v421_v54, %v421_v54  ;;  %v919_v58 = vcombine.low %v421_v54, %v421_v54 }
  0x9d   : > { %v310_v59 = vsel %vm309_vm3, %v307_v56, %v308_v55  ;;  %922 = vmatprep.subr.msk.bf16.mxu0 %vm504_vm8, %v920_v57  ;;  %v506_v60 = vsel %vm504_vm8, %v919_v58, 0 }
  0x9e   : > { %v312_v61 = vsel %vm311_vm10, %v304_v53, %v310_v59  ;;  %v321_v62 = vpop.permute.xlu1 %320  ;;  %525 = vmatpush1.bf16.msra.mxu0 %v506_v60  ;;  %v319_v63 = vpop.permute.xlu0 %318 }
  0x9f   : > { %v997_v0 = vld [vmem:[#allocation2 + $0x20] ss:$12 sps:$4 sm:$0xff]   ;;  %315 = vst [vmem:[#allocation2] sm:$0xcc] %v312_v61  ;;  %v323_v1 = vrot.slane %v321_v62, 4  ;;  %v322_v2 = vrot.slane %v319_v63, 4 }
  0xa0   : > { %330 = vst.msk [vmem:[#allocation2 + $0x14] sm:$0x3] %vm293_vm0, %v321_v62  ;;  %954 = vmatprep.subr.bf16.mxu1 %v997_v0 }
  0xa1   : > { %v324_v3 = vsel %vm309_vm3, %v322_v2, %v323_v1  ;;  %955 = vmatpush3.bf16.msra.mxu1 %v997_v0 }
  0xa2   : > { %v326_v4 = vsel %vm325_vm11, %v319_v63, %v324_v3  ;;  %v334_v5 = vpop.permute.xlu1 %333  ;;  %v332_v6 = vpop.permute.xlu0 %331  ;;  %v998_v7 = vld [vmem:[#allocation2 + $0x1c] ss:$12 sps:$4 sm:$0xff]   ;;  %v1000_v8 = vld [vmem:[#allocation2 + $0x18] ss:$12 sps:$4 sm:$0xff]  }
  0xa3   : > { %329 = vst [vmem:[#allocation2 + $0xc] sm:$0x33] %v326_v4  ;;  %v336_v9 = vrot.slane %v334_v5, 4  ;;  %343 = vst.msk [vmem:[#allocation2 + $0x14] sm:$0xc] %vm316_vm2, %v334_v5  ;;  %v335_v10 = vrot.slane %v332_v6, 4  ;;  %526 = vmatprep.subr.bf16.mxu0 %v998_v7 }
  0xa4   : > { %527 = vmatpush1.bf16.msra.mxu0 %v1000_v8 }
  0xa5   : > { %v337_v11 = vsel %vm309_vm3, %v335_v10, %v336_v9 }
  0xa6   : > { %v339_v14 = vsel %vm338_vm12, %v332_v6, %v337_v11 }
  0xa7   : > { %342 = vst [vmem:[#allocation2 + $0xc] sm:$0xcc] %v339_v14 }
  0xaa   : > { %v1001_v15 = vld [vmem:[#allocation2 + $0x8] ss:$12 sps:$4 sm:$0xff]  }
  0xab   : > { %956 = vmatprep.subr.bf16.mxu1 %v1001_v15 }
  0xac   : > { %957 = vmatpush3.bf16.msra.mxu1 %v1001_v15 }
  0xae   : > { %v1003_v17 = vld [vmem:[#allocation2 + $0x4] ss:$12 sps:$4 sm:$0xff]   ;;  %v1006_v18 = vld [vmem:[#allocation2] ss:$12 sps:$4 sm:$0xff]  }
  0xaf   : > { %528 = vmatprep.subr.bf16.mxu0 %v1003_v17  ;;  %959 = vmatmul.mubr.msk.bf16.vlgmr.msra.gmra.mxu1 %vm497_vm1, %v1005_v16  ;;  %v445_v20 = vpop.permute.xlu1 %444  ;;  %v440_v21 = vpop.permute.xlu0 %439 }
  0xb0   : > { %529 = vmatpush1.bf16.msra.mxu0 %v1006_v18  ;;  %761 = vmatprep.mubr.bf16.mxu1 %v1079_v13 }
  0xb1   : > { %962 = vmatprep.subr.bf16.mxu0 %v1080_v19 }
  0xb3   : > { %923 = vmatmul.mubr.msk.bf16.vlgmr.msra.gmra.mxu0 %vm497_vm1, %v1135_v12  ;;  %v430_v23 = vpop.permute.xlu1 %429  ;;  %v435_v30 = vpop.permute.xlu0 %434 }
  0xb4   : > { %556 = vmatprep.mubr.bf16.mxu0 %v1079_v13 }
  0xbb   : > { %924 = vmatmul.mubr.msk.bf16.gmra.mxu0 %vm497_vm1, %v1005_v16 }
  0xbc   : > { %966 = vmatprep.mubr.msk.bf16.mxu0 %vm1081_vm13, %v1080_v19 }
 0x16f   : > { %v960_v22 = vpop.f32.mrf.mxu1 }
 0x170   : > { %v1191_v24 = vadd.f32 %v960_v22, %v440_v21 }
 0x171   : > { %v601_v25 = vpop.f32.mrf.mxu1 }
 0x172   : > { %v935_v26 = vmul.f32 -1.442695, %v1191_v24  ;;  %v1194_v12 = vadd.f32 %v601_v25, %v430_v23 }
 0x173   : > { %v548_v13 = vpop.f32.mrf.mxu0  ;;  %v961_v27 = vpop.f32.mrf.mxu1 }
 0x174   : > { %1008 = vpow2.f32 %v935_v26  ;;  %v929_v28 = vmul.f32 -1.442695, %v1194_v12  ;;  %v1197_v29 = vadd.f32 %v961_v27, %v445_v20  ;;  %v1208_v41 = vadd.f32 %v548_v13, %v430_v23 }
 0x175   : > { %v550_v31 = vpop.f32.mrf.mxu0  ;;  %v604_v32 = vpop.f32.mrf.mxu1 }
 0x176   : > { %1010 = vpow2.f32 %v929_v28  ;;  %v938_v33 = vmul.f32 -1.442695, %v1197_v29  ;;  %v1200_v34 = vadd.f32 %v550_v31, %v430_v23  ;;  %v1202_v35 = vadd.f32 %v604_v32, %v435_v30  ;;  %v1007_v32 = vld [vmem:[%s1258_s3] sm:$0xff]  }
 0x177   : > { %v552_v36 = vpop.f32.mrf.mxu0  ;;  %v927_v49 = vmul.f32 -1.442695, %v1208_v41 }
 0x178   : > { %1012 = vpow2.f32 %v938_v33  ;;  %v932_v37 = vmul.f32 -1.442695, %v1202_v35  ;;  %v928_v39 = vmul.f32 -1.442695, %v1200_v34  ;;  %v1210_v43 = vadd.f32 %v552_v36, %v435_v30 }
 0x179   : > { %v554_v38 = vpop.f32.mrf.mxu0 }
 0x17a   : > { %v1206_v40 = vadd.f32 %v554_v38, %v435_v30  ;;  %1014 = vpow2.f32 %v932_v37  ;;  %v930_v51 = vmul.f32 -1.442695, %v1210_v43 }
 0x17b   : > { %v558_v42 = vpop.f32.mrf.mxu0  ;;  %1016 = vpow2.f32 %v928_v39 }
 0x17c   : > { %v931_v44 = vmul.f32 -1.442695, %v1206_v40  ;;  %v1213_v45 = vadd.f32 %v558_v42, %v440_v21 }
 0x17d   : > { %v560_v46 = vpop.f32.mrf.mxu0 }
 0x17e   : > { %v933_v47 = vmul.f32 -1.442695, %v1213_v45  ;;  %v1216_v48 = vadd.f32 %v560_v46, %v440_v21  ;;  %1018 = vpow2.f32 %v931_v44 }
 0x17f   : > { %v562_v50 = vpop.f32.mrf.mxu0 }
 0x180   : > { %v934_v52 = vmul.f32 -1.442695, %v1216_v48  ;;  %v1221_v53 = vadd.f32 %v562_v50, %v445_v20  ;;  %1020 = vpow2.f32 %v933_v47 }
 0x181   : > { %v1009_v54 = vpop.eup %1008  ;;  %v564_v55 = vpop.f32.mrf.mxu0 }
 0x182   : > { %v660_v56 = vadd.f32 1.0, %v1009_v54  ;;  %1022 = vpow2.f32 %v934_v52  ;;  %v936_v57 = vmul.f32 -1.442695, %v1221_v53  ;;  %v1224_v58 = vadd.f32 %v564_v55, %v445_v20  ;;  %v718_v54 = vpop.permute.xlu1 %717 }
 0x183   : > { %v1011_v59 = vpop.eup %1010  ;;  %1024 = vpow2.f32 %v927_v49 }
 0x184   : > { %1026 = vpow2.f32 %v930_v51  ;;  %v937_v60 = vmul.f32 -1.442695, %v1224_v58  ;;  %v654_v62 = vadd.f32 1.0, %v1011_v59 }
 0x185   : > { %1028 = vpow2.f32 %v936_v57  ;;  %v1013_v61 = vpop.eup %1012 }
 0x186   : > { %1030 = vrcp.f32 %v660_v56  ;;  %v663_v63 = vadd.f32 1.0, %v1013_v61 }
 0x187   : > { %1032 = vpow2.f32 %v937_v60  ;;  %v1015_v0 = vpop.eup %1014 }
 0x188   : > { %1034 = vrcp.f32 %v663_v63  ;;  %v657_v1 = vadd.f32 1.0, %v1015_v0  ;;  %v1017_v2 = vpop.eup %1016 }
 0x189   : > { %1036 = vrcp.f32 %v654_v62  ;;  %v653_v5 = vadd.f32 1.0, %v1017_v2  ;;  %v824_v62 = vld [vmem:[%s266_s10 + $0x10] sm:$0xff]  ;;  %v713_v2 = vpop.permute.xlu0 %712 }
 0x18a   : > { %1038 = vrcp.f32 %v657_v1 }
 0x18b   : > { %v1019_v3 = vpop.eup %1018  ;;  %1040 = vrcp.f32 %v653_v5 }
 0x18c   : > { %v656_v7 = vadd.f32 1.0, %v1019_v3 }
 0x18d   : > { %v1021_v4 = vpop.eup %1020 }
 0x18e   : > { %v658_v14 = vadd.f32 1.0, %v1021_v4  ;;  %1042 = vrcp.f32 %v656_v7 }
 0x18f   : > { %v1023_v6 = vpop.eup %1022 }
 0x190   : > { %v1025_v8 = vpop.eup %1024  ;;  %v659_v9 = vadd.f32 1.0, %v1023_v6 }
 0x191   : > { %v1027_v10 = vpop.eup %1026  ;;  %v652_v22 = vadd.f32 1.0, %v1025_v8 }
 0x192   : > { %v1029_v11 = vpop.eup %1028  ;;  %v655_v18 = vadd.f32 1.0, %v1027_v10  ;;  %1044 = vrcp.f32 %v659_v9  ;;  %v822_v9 = vld [vmem:[%s266_s10] sm:$0xff] }
 0x193   : > { %v1031_v15 = vpop.eup %1030  ;;  %v661_v16 = vadd.f32 1.0, %v1029_v11  ;;  %v823_v11 = vld [vmem:[%s266_s10 + $0x8] sm:$0xff] }
 0x194   : > { %v1033_v17 = vpop.eup %1032  ;;  %v696_v25 = vmul.f32 %v1031_v15, %v1191_v24 }
 0x195   : > { %1046 = vrcp.f32 %v661_v16  ;;  %v662_v20 = vadd.f32 1.0, %v1033_v17  ;;  %v1035_v21 = vpop.eup %1034 }
 0x196   : > { %1048 = vrcp.f32 %v658_v14  ;;  %v1037_v23 = vpop.eup %1036  ;;  %v699_v26 = vmul.f32 %v1035_v21, %v1197_v29 }
 0x197   : > { %1050 = vrcp.f32 %v662_v20  ;;  %v1039_v13 = vpop.eup %1038  ;;  %v690_v30 = vmul.f32 %v1037_v23, %v1194_v12 }
 0x198   : > { %1052 = vrcp.f32 %v655_v18  ;;  %v707_v27 = vpack.c.bf16 %v699_v26, %v696_v25  ;;  %v693_v28 = vmul.f32 %v1039_v13, %v1202_v35  ;;  %v1041_v24 = vpop.eup %1040 }
 0x199   : > { %1054 = vrcp.f32 %v652_v22  ;;  %v689_v47 = vmul.f32 %v1041_v24, %v1200_v34 }
 0x19a   : > { %963 = vmatpush3.bf16.msra.mxu0 %v707_v27  ;;  %v704_v31 = vpack.c.bf16 %v693_v28, %v690_v30 }
 0x19b   : > { %964 = vmatprep.subr.bf16.mxu0 %v1080_v19  ;;  %v1043_v29 = vpop.eup %1042 }
 0x19c   : > { %v692_v19 = vmul.f32 %v1043_v29, %v1206_v40 }
 0x19e   : > { %965 = vmatpush3.bf16.msra.mxu0 %v704_v31  ;;  %v703_v52 = vpack.c.bf16 %v692_v19, %v689_v47 }
 0x19f   : > { %v1045_v33 = vpop.eup %1044 }
 0x1a0   : > { %v695_v39 = vmul.f32 %v1045_v33, %v1216_v48 }
 0x1a1   : > { %967 = vmatmul.mubr.msk.bf16.vlgmr.msra.gmra.mxu0 %vm725_vm14, %v1007_v32 }
 0x1a2   : > { %v1047_v36 = vpop.eup %1046 }
 0x1a3   : > { %v1049_v35 = vpop.eup %1048  ;;  %v697_v12 = vmul.f32 %v1047_v36, %v1221_v53 }
 0x1a4   : > { %v1051_v37 = vpop.eup %1050  ;;  %v694_v44 = vmul.f32 %v1049_v35, %v1213_v45 }
 0x1a5   : > { %v1053_v38 = vpop.eup %1052  ;;  %v698_v42 = vmul.f32 %v1051_v37, %v1224_v58 }
 0x1a6   : > { %v1055_v46 = vpop.eup %1054  ;;  %v691_v50 = vmul.f32 %v1053_v38, %v1210_v43  ;;  %v705_v51 = vpack.c.bf16 %v697_v12, %v694_v44 }
 0x1a7   : > { %v706_v49 = vpack.c.bf16 %v698_v42, %v695_v39  ;;  %v688_v53 = vmul.f32 %v1055_v46, %v1208_v41 }
 0x1a9   : > { %741 = vmatprep.subr.bf16.mxu1 %v706_v49  ;;  %v702_v40 = vpack.c.bf16 %v691_v50, %v688_v53 }
 0x1aa   : > { %742 = vmatpush1.bf16.msra.mxu1 %v705_v51 }
 0x1ab   : > { %743 = vmatprep.subr.bf16.mxu1 %v703_v52 }
 0x1ae   : > { %744 = vmatpush1.bf16.msra.mxu1 %v702_v40 }
 0x1b1   : > { %940 = vmatmul.mubr.msk.bf16.vlgmr.msra.gmra.mxu1 %vm725_vm14, %v1007_v32 }
 0x261   : > { %v806_v48 = vpop.f32.mrf.mxu0 }
 0x262   : > { %v807_v5 = vadd.f32 %v806_v48, %v713_v2 }
 0x263   : > { %v968_v45 = vpop.f32.mrf.mxu0 }
 0x265   : > { %v809_v55 = vpop.f32.mrf.mxu0 }
 0x266   : > { %v810_v34 = vadd.f32 %v809_v55, %v718_v54 }
 0x267   : > { %v969_v56 = vpop.f32.mrf.mxu0 }
 0x268   : > { %v815_v57 = vmul.f32 0.5, %v810_v34 }
 0x26a   : > { %v820_v43 = vmul.f32 1.442695, %v815_v57 }
 0x26c   : > { %1056 = vpow2.f32 %v820_v43 }
 0x271   : > { %v763_v58 = vpop.f32.mrf.mxu1 }
 0x272   : > { %v764_v14 = vadd.f32 %v763_v58, %v713_v2 }
 0x273   : > { %v765_v59 = vpop.f32.mrf.mxu1 }
 0x274   : > { %v766_v17 = vadd.f32 %v765_v59, %v713_v2 }
 0x275   : > { %v767_v41 = vpop.f32.mrf.mxu1 }
 0x276   : > { %v768_v60 = vadd.f32 %v767_v41, %v718_v54 }
 0x277   : > { %v769_v61 = vpop.f32.mrf.mxu1 }
 0x278   : > { %v813_v63 = vmul.f32 0.5, %v768_v60  ;;  %v770_v0 = vadd.f32 %v769_v61, %v718_v54 }
 0x279   : > { %v1057_v1 = vpop.eup %1056 }
 0x27a   : > { %v816_v3 = vmul.f32 1.442695, %v813_v63  ;;  %v814_v4 = vmul.f32 0.5, %v770_v0  ;;  %v827_v6 = vmul.f32 %v1057_v1, %v824_v62 }
 0x27c   : > { %1058 = vpow2.f32 %v816_v3  ;;  %v818_v7 = vmul.f32 1.442695, %v814_v4  ;;  %v830_v8 = vadd.f32 %v827_v6, %v807_v5 }
 0x27e   : > { %1060 = vpow2.f32 %v818_v7  ;;  %834 = vst.msk [vmem:[%s271_s12 + $0x10] sm:$0xff] %vm833_vm15, %v830_v8 }
 0x289   : > { %v1059_v10 = vpop.eup %1058 }
 0x28a   : > { %v825_v15 = vmul.f32 %v1059_v10, %v822_v9 }
 0x28b   : > { %v1061_v16 = vpop.eup %1060 }
 0x28c   : > { %v828_v18 = vadd.f32 %v825_v15, %v764_v14  ;;  %v826_v20 = vmul.f32 %v1061_v16, %v823_v11 }
 0x28e   : > { %831 = vst [vmem:[%s271_s12] sm:$0xff] %v828_v18  ;;  %v829_v21 = vadd.f32 %v826_v20, %v766_v17 }
 0x290   : > { %832 = vst [vmem:[%s271_s12 + $0x8] sm:$0xff] %v829_v21 }
 0x291 PF: > { %s16_s21 = sadd.s32 1, %s1068_s21  }
 0x292   : > { %p13_p4 = scmp.ge.s32.totalorder %s16_s21, 4  }
 0x294   :  { %15 = sbr.rel (!%p13_p4) target bundleno = 1 (0x1), region = 77 }

</bundles_post_ra>
